<compile_context>
chip_gen: v6e
topology: v6e:2x2x1
jax: 0.10.0
libtpu: 0.0.40
codegen_flags: <defaults>
</compile_context>

<pallas_src>
import functools
import math

import jax
import jax.numpy as jnp
from jax import lax
from jax.experimental import pallas as pl
from jax.experimental.pallas import tpu as pltpu


def _flash_attn_kernel(active_ref, fetch_ref,           # scalar prefetch (SMEM)
                       q_ref, k_ref, v_ref, mask_ref,   # VMEM input blocks
                       o_ref,                           # VMEM output block
                       q_sc, m_sc, l_sc, acc_sc,        # VMEM scratch
                       *, scale, mxu_bf16):
    """One (batch, q-tile) output block; kv tiles stream along grid axis 2."""
    kv = pl.program_id(2)
    nkv = pl.num_programs(2)
    qi = pl.program_id(1)

    @pl.when(kv == 0)
    def _init():
        # Hoisted scale+cast of the resident Q block: once per (b, q-tile),
        # not once per kv step.
        q_sc[...] = q_ref[0].astype(jnp.float32) * scale
        m_sc[...] = jnp.full_like(m_sc, -jnp.inf)
        l_sc[...] = jnp.zeros_like(l_sc)
        acc_sc[...] = jnp.zeros_like(acc_sc)

    block_active = active_ref[qi * nkv + kv] != 0

    @pl.when(block_active)
    def _compute():
        q = q_sc[...]                                  # (tq, D) f32, pre-scaled
        k = k_ref[0].astype(jnp.float32)               # (tk, D)
        v = v_ref[0].astype(jnp.float32)               # (tk, D)
        m = mask_ref[...].astype(jnp.float32)          # (tq, tk)

        # scores = Q_scaled @ K^T, contracting feature dims directly on the MXU.
        if mxu_bf16:
            s = lax.dot_general(q.astype(jnp.bfloat16), k.astype(jnp.bfloat16),
                                dimension_numbers=(((1,), (1,)), ((), ())),
                                preferred_element_type=jnp.float32)
        else:
            s = lax.dot_general(q, k,
                                dimension_numbers=(((1,), (1,)), ((), ())),
                                preferred_element_type=jnp.float32)

        # Online softmax with the mask folded into the un-normalized probs.
        # The softmax denominator cancels against the masked renormalization,
        # so only the masked row sum is tracked (exact for any mask values).
        m_prev = m_sc[...]
        m_new = jnp.maximum(m_prev, jnp.max(s, axis=-1, keepdims=True))
        alpha = jnp.exp(m_prev - m_new)
        p = jnp.exp(s - m_new) * m                     # masked, un-normalized
        l_sc[...] = alpha * l_sc[...] + jnp.sum(p, axis=-1, keepdims=True)
        pv_l = p.astype(jnp.bfloat16) if mxu_bf16 else p
        pv_r = v.astype(jnp.bfloat16) if mxu_bf16 else v
        acc_sc[...] = alpha * acc_sc[...] + jnp.dot(
            pv_l, pv_r, preferred_element_type=jnp.float32)
        m_sc[...] = m_new

    @pl.when(kv == nkv - 1)
    def _finalize():
        # Single normalization.  approx=False keeps full f32 precision to match
        # torch's .float() compute.
        # NOTE: a fully-masked row yields 0/0 -> NaN, same as the PyTorch ref.
        inv_l = pl.reciprocal(l_sc[...], approx=False)
        o_ref[0] = (acc_sc[...] * inv_l).astype(o_ref.dtype)


def _pick_tile(n, candidates):
    """Largest candidate that divides n, else the full extent (keeps the
    (8,128) block constraint satisfied via 'equals full array dim')."""
    for t in candidates:
        if t <= n and n % t == 0:
            return t
    return n


def scaled_dot_product_attention(Q, K, V, mask, d_model, *, mxu_bf16=False):
    B, Lq, D = Q.shape
    _, Lk, _ = K.shape
    assert mask.shape[0] == Lq, (
        f"Mask size ({mask.shape[0]}) must be equal to sequence length ({Lq})"
    )
    scale = 1.0 / math.sqrt(d_model)

    # tq/tk = 512 halves K/V re-streaming vs 256 and still fits comfortably in
    # every generation's scoped VMEM (few MiB of blocks + compiler temps).
    tq = _pick_tile(Lq, (512, 256, 128))
    tk = _pick_tile(Lk, (512, 256, 128))
    nq, nk = Lq // tq, Lk // tk
    grid = (B, nq, nk)

    # --- block-sparsity metadata from the mask ------------------------------
    # active[qi,ki]  : any nonzero mask entry in that (tq,tk) block.
    # fetch[qi,ki]   : kv-block index to DMA; inactive blocks repeat the
    #                  previous active index so no new K/V/mask DMA is issued.
    mblk = mask.reshape(nq, tq, nk, tk)
    active = jnp.any(mblk != 0, axis=(1, 3))                       # (nq, nk)
    ki_ids = lax.broadcasted_iota(jnp.int32, (nq, nk), 1)
    fetch = jnp.where(active, ki_ids, -1)
    fetch = lax.cummax(fetch, axis=1)
    fetch = jnp.maximum(fetch, 0).astype(jnp.int32)
    active_flat = active.astype(jnp.int32).reshape(-1)             # (nq*nk,)
    fetch_flat = fetch.reshape(-1)                                 # (nq*nk,)

    kernel = functools.partial(_flash_attn_kernel, scale=scale, mxu_bf16=mxu_bf16)

    return pl.pallas_call(
        kernel,
        out_shape=jax.ShapeDtypeStruct((B, Lq, D), jnp.float32),
        grid_spec=pltpu.PrefetchScalarGridSpec(
            num_scalar_prefetch=2,
            grid=grid,
            in_specs=[
                # Q block constant along kv -> fetched once per (b, q-tile).
                pl.BlockSpec((1, tq, D), lambda b, qi, ki, act, ftc: (b, qi, 0)),
                pl.BlockSpec((1, tk, D),
                             lambda b, qi, ki, act, ftc: (b, ftc[qi * nk + ki], 0)),
                pl.BlockSpec((1, tk, D),
                             lambda b, qi, ki, act, ftc: (b, ftc[qi * nk + ki], 0)),
                # Mask streamed in its caller dtype (bool/int8 cuts HBM traffic
                # 4x vs f32); cast to f32 in-kernel.
                pl.BlockSpec((tq, tk),
                             lambda b, qi, ki, act, ftc: (qi, ftc[qi * nk + ki])),
            ],
            out_specs=pl.BlockSpec((1, tq, D), lambda b, qi, ki, act, ftc: (b, qi, 0)),
            scratch_shapes=[
                pltpu.VMEM((tq, D), jnp.float32),   # pre-scaled Q
                pltpu.VMEM((tq, 1), jnp.float32),   # running max
                pltpu.VMEM((tq, 1), jnp.float32),   # running masked row sum
                pltpu.VMEM((tq, D), jnp.float32),   # f32 output accumulator
            ],
        ),
        compiler_params=pltpu.CompilerParams(
            dimension_semantics=("parallel", "parallel", "arbitrary"),
            vmem_limit_bytes=32 * 1024 * 1024,   # safe on v5e(16 MiB default)/v7x(32 MiB)
        ),
    )(active_flat, fetch_flat, Q, K, V, mask)


def _reference(Q, K, V, mask, d_model):
    """Pure-JAX mirror of the PyTorch forward (softmax -> mul mask -> renorm)."""
    scale = 1.0 / math.sqrt(d_model)
    s = jnp.einsum("bqd,bkd->bqk",
                   Q.astype(jnp.float32), K.astype(jnp.float32)) * scale
    p = jax.nn.softmax(s, axis=-1)
    p = p * mask.astype(jnp.float32)
    p = p / jnp.sum(p, axis=-1, keepdims=True)
    return jnp.einsum("bqk,bkd->bqd", p, V.astype(jnp.float32))


if __name__ == "__main__":
    key = jax.random.PRNGKey(0)

    # --- small test (single block, f32 mask = exactly the torch call shape) --
    B, L, d_model = 2, 8, 32
    kq, kk, kv, k2 = jax.random.split(key, 4)
    Q = jax.random.normal(kq, (B, L, d_model), dtype=jnp.float32)
    K = jax.random.normal(kk, (B, L, d_model), dtype=jnp.float32)
    V = jax.random.normal(kv, (B, L, d_model), dtype=jnp.float32)
    mask = jnp.tril(jnp.ones((L, L), dtype=jnp.float32))   # causal 0/1 mask

    out = jax.block_until_ready(scaled_dot_product_attention(Q, K, V, mask, d_model))
    ref = _reference(Q, K, V, mask, d_model)
    assert out.shape == (B, L, d_model)
    assert jnp.allclose(out, ref, atol=1e-5, rtol=1e-5)

    # --- larger test: tiled online softmax, bool mask stream, block skipping --
    B2, L2, D2 = 2, 1024, 64          # grid = (2, 2, 2); one causal block skipped
    ka, kb, kc = jax.random.split(k2, 3)
    Q2 = jax.random.normal(ka, (B2, L2, D2), dtype=jnp.float32)
    K2 = jax.random.normal(kb, (B2, L2, D2), dtype=jnp.float32)
    V2 = jax.random.normal(kc, (B2, L2, D2), dtype=jnp.float32)
    mask2 = jnp.tril(jnp.ones((L2, L2), dtype=jnp.bool_))   # compressed mask stream

    out2 = jax.block_until_ready(
        scaled_dot_product_attention(Q2, K2, V2, mask2, D2))
    ref2 = _reference(Q2, K2, V2, mask2, D2)
    assert out2.shape == (B2, L2, D2)
    assert jnp.allclose(out2, ref2, atol=1e-4, rtol=1e-4)

    # TODO(synk): for d_model < 128, a lane-dense packed layout (folding batch
    # into lanes or padding D to 128) would lift MXU/vst lane utilization; left
    # out to preserve the module's (B, L, d_model) layout contract.
    print("KERNEL_OK")
</pallas_src>

<mosaic_0001>
module attributes {stable_mosaic.version = 11 : i64} {
  func.func @_flash_attn_kernel(%arg0: i32, %arg1: i32, %arg2: i32, %arg3: memref<1xi32, #tpu.memory_space<smem>>, %arg4: memref<1xi32, #tpu.memory_space<smem>>, %arg5: memref<1x8x32xf32, #tpu.memory_space<vmem>>, %arg6: memref<1x8x32xf32, #tpu.memory_space<vmem>>, %arg7: memref<1x8x32xf32, #tpu.memory_space<vmem>>, %arg8: memref<8x8xf32, #tpu.memory_space<vmem>>, %arg9: memref<1x8x32xf32, #tpu.memory_space<vmem>>, %arg10: memref<8x32xf32, #tpu.memory_space<vmem>>, %arg11: memref<8x1xf32, #tpu.memory_space<vmem>>, %arg12: memref<8x1xf32, #tpu.memory_space<vmem>>, %arg13: memref<8x32xf32, #tpu.memory_space<vmem>>) attributes {dimension_semantics = [#tpu.dimension_semantics<parallel>, #tpu.dimension_semantics<parallel>, #tpu.dimension_semantics<arbitrary>], iteration_bounds = array<i64: 2, 1, 1>, scalar_prefetch = 2 : i64, scratch_operands = 4 : i64, tpu.core_type = #tpu.core_type<tc>, window_params = [{transform_indices = @transform_0, window_bounds = array<i64: 1, 8, 32>}, {transform_indices = @transform_1, window_bounds = array<i64: 1, 8, 32>}, {transform_indices = @transform_2, window_bounds = array<i64: 1, 8, 32>}, {transform_indices = @transform_3, window_bounds = array<i64: 8, 8>}, {transform_indices = @transform_4, window_bounds = array<i64: 1, 8, 32>}]} {
    %c0_i32 = arith.constant 0 : i32
    %0 = arith.cmpi eq, %arg2, %c0_i32 : i32
    %1 = arith.extui %0 : i1 to i32
    %c0_i32_0 = arith.constant 0 : i32
    %2 = arith.cmpi ne, %1, %c0_i32_0 : i32
    scf.if %2 {
      %c0 = arith.constant 0 : index
      %c0_5 = arith.constant 0 : index
      %c0_6 = arith.constant 0 : index
      %13 = vector.load %arg5[%c0, %c0_5, %c0_6] : memref<1x8x32xf32, #tpu.memory_space<vmem>>, vector<1x8x32xf32>
      %14 = vector.shape_cast %13 : vector<1x8x32xf32> to vector<8x32xf32>
      %cst = arith.constant 0.176776692 : f32
      %15 = vector.broadcast %cst : f32 to vector<8x32xf32>
      %16 = arith.mulf %14, %15 : vector<8x32xf32>
      %c0_7 = arith.constant 0 : index
      %c0_8 = arith.constant 0 : index
      %17 = vector.load %arg10[%c0_7, %c0_8] : memref<8x32xf32, #tpu.memory_space<vmem>>, vector<8x32xf32>
      tpu.vector_store %arg10[%c0_7, %c0_8], %16 {strides = array<i32>} : memref<8x32xf32, #tpu.memory_space<vmem>>, vector<8x32xf32>,
      %cst_9 = arith.constant 0xFF800000 : f32
      %18 = vector.broadcast %cst_9 : f32 to vector<8x1xf32>
      %c0_10 = arith.constant 0 : index
      %c0_11 = arith.constant 0 : index
      %19 = vector.load %arg11[%c0_10, %c0_11] : memref<8x1xf32, #tpu.memory_space<vmem>>, vector<8x1xf32>
      tpu.vector_store %arg11[%c0_10, %c0_11], %18 {strides = array<i32>} : memref<8x1xf32, #tpu.memory_space<vmem>>, vector<8x1xf32>,
      %cst_12 = arith.constant 0.000000e+00 : f32
      %20 = vector.broadcast %cst_12 : f32 to vector<8x1xf32>
      %c0_13 = arith.constant 0 : index
      %c0_14 = arith.constant 0 : index
      %21 = vector.load %arg12[%c0_13, %c0_14] : memref<8x1xf32, #tpu.memory_space<vmem>>, vector<8x1xf32>
      tpu.vector_store %arg12[%c0_13, %c0_14], %20 {strides = array<i32>} : memref<8x1xf32, #tpu.memory_space<vmem>>, vector<8x1xf32>,
      %cst_15 = arith.constant 0.000000e+00 : f32
      %22 = vector.broadcast %cst_15 : f32 to vector<8x32xf32>
      %c0_16 = arith.constant 0 : index
      %c0_17 = arith.constant 0 : index
      %23 = vector.load %arg13[%c0_16, %c0_17] : memref<8x32xf32, #tpu.memory_space<vmem>>, vector<8x32xf32>
      tpu.vector_store %arg13[%c0_16, %c0_17], %22 {strides = array<i32>} : memref<8x32xf32, #tpu.memory_space<vmem>>, vector<8x32xf32>,
    } else {
    }
    %c1_i32 = arith.constant 1 : i32
    %3 = arith.muli %arg1, %c1_i32 : i32
    %4 = arith.addi %3, %arg2 : i32
    %5 = arith.index_cast %4 : i32 to index
    %6 = memref.load %arg3[%5] : memref<1xi32, #tpu.memory_space<smem>>
    %c0_i32_1 = arith.constant 0 : i32
    %7 = arith.cmpi ne, %6, %c0_i32_1 : i32
    %8 = arith.extui %7 : i1 to i32
    %c0_i32_2 = arith.constant 0 : i32
    %9 = arith.cmpi ne, %8, %c0_i32_2 : i32
    scf.if %9 {
      %c0 = arith.constant 0 : index
      %c0_5 = arith.constant 0 : index
      %13 = vector.load %arg10[%c0, %c0_5] : memref<8x32xf32, #tpu.memory_space<vmem>>, vector<8x32xf32>
      %c0_6 = arith.constant 0 : index
      %c0_7 = arith.constant 0 : index
      %c0_8 = arith.constant 0 : index
      %14 = vector.load %arg6[%c0_6, %c0_7, %c0_8] : memref<1x8x32xf32, #tpu.memory_space<vmem>>, vector<1x8x32xf32>
      %15 = vector.shape_cast %14 : vector<1x8x32xf32> to vector<8x32xf32>
      %c0_9 = arith.constant 0 : index
      %c0_10 = arith.constant 0 : index
      %c0_11 = arith.constant 0 : index
      %16 = vector.load %arg7[%c0_9, %c0_10, %c0_11] : memref<1x8x32xf32, #tpu.memory_space<vmem>>, vector<1x8x32xf32>
      %17 = vector.shape_cast %16 : vector<1x8x32xf32> to vector<8x32xf32>
      %c0_12 = arith.constant 0 : index
      %c0_13 = arith.constant 0 : index
      %18 = vector.load %arg8[%c0_12, %c0_13] : memref<8x8xf32, #tpu.memory_space<vmem>>, vector<8x8xf32>
      %cst = arith.constant dense<0.000000e+00> : vector<8x8xf32>
      %19 = tpu.matmul %13, %15, %cst {dimension_numbers = #tpu.dot_dimension_numbers<[1], [1], [0], [0], [0, 0, 1, 0], [], []>} : vector<8x32xf32>, vector<8x32xf32>, vector<8x8xf32> -> vector<8x8xf32>
      %c0_14 = arith.constant 0 : index
      %c0_15 = arith.constant 0 : index
      %20 = vector.load %arg11[%c0_14, %c0_15] : memref<8x1xf32, #tpu.memory_space<vmem>>, vector<8x1xf32>
      %cst_16 = arith.constant dense<0xFF800000> : vector<8xf32>
      %21 = vector.multi_reduction <maximumf>, %19, %cst_16 [1] : vector<8x8xf32> to vector<8xf32>
      %22 = vector.shape_cast %21 : vector<8xf32> to vector<8x1xf32>
      %23 = arith.maximumf %20, %22 : vector<8x1xf32>
      %24 = arith.subf %20, %23 : vector<8x1xf32>
      %25 = math.exp %24 : vector<8x1xf32>
      %26 = vector.broadcast %23 : vector<8x1xf32> to vector<8x8xf32>
      %27 = arith.subf %19, %26 : vector<8x8xf32>
      %28 = math.exp %27 : vector<8x8xf32>
      %29 = arith.mulf %28, %18 : vector<8x8xf32>
      %c0_17 = arith.constant 0 : index
      %c0_18 = arith.constant 0 : index
      %30 = vector.load %arg12[%c0_17, %c0_18] : memref<8x1xf32, #tpu.memory_space<vmem>>, vector<8x1xf32>
      %31 = arith.mulf %25, %30 : vector<8x1xf32>
      %cst_19 = arith.constant dense<0.000000e+00> : vector<8xf32>
      %32 = vector.multi_reduction <add>, %29, %cst_19 [1] : vector<8x8xf32> to vector<8xf32>
      %33 = vector.shape_cast %32 : vector<8xf32> to vector<8x1xf32>
      %34 = arith.addf %31, %33 : vector<8x1xf32>
      %c0_20 = arith.constant 0 : index
      %c0_21 = arith.constant 0 : index
      %35 = vector.load %arg12[%c0_20, %c0_21] : memref<8x1xf32, #tpu.memory_space<vmem>>, vector<8x1xf32>
      tpu.vector_store %arg12[%c0_20, %c0_21], %34 {strides = array<i32>} : memref<8x1xf32, #tpu.memory_space<vmem>>, vector<8x1xf32>,
      %c0_22 = arith.constant 0 : index
      %c0_23 = arith.constant 0 : index
      %36 = vector.load %arg13[%c0_22, %c0_23] : memref<8x32xf32, #tpu.memory_space<vmem>>, vector<8x32xf32>
      %37 = vector.broadcast %25 : vector<8x1xf32> to vector<8x32xf32>
      %38 = arith.mulf %37, %36 : vector<8x32xf32>
      %cst_24 = arith.constant dense<0.000000e+00> : vector<8x32xf32>
      %39 = tpu.matmul %29, %17, %cst_24 {dimension_numbers = #tpu.dot_dimension_numbers<[1], [0], [0], [1], [0, 0, 1, 1], [], []>} : vector<8x8xf32>, vector<8x32xf32>, vector<8x32xf32> -> vector<8x32xf32>
      %40 = arith.addf %38, %39 : vector<8x32xf32>
      %c0_25 = arith.constant 0 : index
      %c0_26 = arith.constant 0 : index
      %41 = vector.load %arg13[%c0_25, %c0_26] : memref<8x32xf32, #tpu.memory_space<vmem>>, vector<8x32xf32>
      tpu.vector_store %arg13[%c0_25, %c0_26], %40 {strides = array<i32>} : memref<8x32xf32, #tpu.memory_space<vmem>>, vector<8x32xf32>,
      %c0_27 = arith.constant 0 : index
      %c0_28 = arith.constant 0 : index
      %42 = vector.load %arg11[%c0_27, %c0_28] : memref<8x1xf32, #tpu.memory_space<vmem>>, vector<8x1xf32>
      tpu.vector_store %arg11[%c0_27, %c0_28], %23 {strides = array<i32>} : memref<8x1xf32, #tpu.memory_space<vmem>>, vector<8x1xf32>,
    } else {
    }
    %c0_i32_3 = arith.constant 0 : i32
    %10 = arith.cmpi eq, %arg2, %c0_i32_3 : i32
    %11 = arith.extui %10 : i1 to i32
    %c0_i32_4 = arith.constant 0 : i32
    %12 = arith.cmpi ne, %11, %c0_i32_4 : i32
    scf.if %12 {
      %c0 = arith.constant 0 : index
      %c0_5 = arith.constant 0 : index
      %13 = vector.load %arg12[%c0, %c0_5] : memref<8x1xf32, #tpu.memory_space<vmem>>, vector<8x1xf32>
      %14 = tpu.reciprocal %13 : vector<8x1xf32> -> vector<8x1xf32>
      %c0_6 = arith.constant 0 : index
      %c0_7 = arith.constant 0 : index
      %15 = vector.load %arg13[%c0_6, %c0_7] : memref<8x32xf32, #tpu.memory_space<vmem>>, vector<8x32xf32>
      %16 = vector.broadcast %14 : vector<8x1xf32> to vector<8x32xf32>
      %17 = arith.mulf %15, %16 : vector<8x32xf32>
      %c0_8 = arith.constant 0 : index
      %c0_9 = arith.constant 0 : index
      %c0_10 = arith.constant 0 : index
      %18 = vector.load %arg9[%c0_8, %c0_9, %c0_10] : memref<1x8x32xf32, #tpu.memory_space<vmem>>, vector<1x8x32xf32>
      %19 = vector.shape_cast %18 : vector<1x8x32xf32> to vector<8x32xf32>
      %20 = vector.shape_cast %17 : vector<8x32xf32> to vector<1x8x32xf32>
      tpu.vector_store %arg9[%c0_8, %c0_9, %c0_10], %20 {strides = array<i32>} : memref<1x8x32xf32, #tpu.memory_space<vmem>>, vector<1x8x32xf32>,
    } else {
    }
    return
  }
  func.func @transform_0(%arg0: i32, %arg1: i32, %arg2: i32, %arg3: memref<1xi32, #tpu.memory_space<smem>>, %arg4: memref<1xi32, #tpu.memory_space<smem>>) -> (i32, i32, i32) {
    %c0_i32 = arith.constant 0 : i32
    %c0_i32_0 = arith.constant 0 : i32
    return %arg0, %arg1, %c0_i32 : i32, i32, i32
  }
  func.func @transform_1(%arg0: i32, %arg1: i32, %arg2: i32, %arg3: memref<1xi32, #tpu.memory_space<smem>>, %arg4: memref<1xi32, #tpu.memory_space<smem>>) -> (i32, i32, i32) {
    %c1_i32 = arith.constant 1 : i32
    %0 = arith.muli %arg1, %c1_i32 : i32
    %1 = arith.addi %0, %arg2 : i32
    %2 = arith.index_cast %1 : i32 to index
    %3 = memref.load %arg4[%2] : memref<1xi32, #tpu.memory_space<smem>>
    %c0_i32 = arith.constant 0 : i32
    %c0_i32_0 = arith.constant 0 : i32
    return %arg0, %3, %c0_i32 : i32, i32, i32
  }
  func.func @transform_2(%arg0: i32, %arg1: i32, %arg2: i32, %arg3: memref<1xi32, #tpu.memory_space<smem>>, %arg4: memref<1xi32, #tpu.memory_space<smem>>) -> (i32, i32, i32) {
    %c1_i32 = arith.constant 1 : i32
    %0 = arith.muli %arg1, %c1_i32 : i32
    %1 = arith.addi %0, %arg2 : i32
    %2 = arith.index_cast %1 : i32 to index
    %3 = memref.load %arg4[%2] : memref<1xi32, #tpu.memory_space<smem>>
    %c0_i32 = arith.constant 0 : i32
    %c0_i32_0 = arith.constant 0 : i32
    return %arg0, %3, %c0_i32 : i32, i32, i32
  }
  func.func @transform_3(%arg0: i32, %arg1: i32, %arg2: i32, %arg3: memref<1xi32, #tpu.memory_space<smem>>, %arg4: memref<1xi32, #tpu.memory_space<smem>>) -> (i32, i32) {
    %c1_i32 = arith.constant 1 : i32
    %0 = arith.muli %arg1, %c1_i32 : i32
    %1 = arith.addi %0, %arg2 : i32
    %2 = arith.index_cast %1 : i32 to index
    %3 = memref.load %arg4[%2] : memref<1xi32, #tpu.memory_space<smem>>
    %c0_i32 = arith.constant 0 : i32
    return %arg1, %3 : i32, i32
  }
  func.func @transform_4(%arg0: i32, %arg1: i32, %arg2: i32, %arg3: memref<1xi32, #tpu.memory_space<smem>>, %arg4: memref<1xi32, #tpu.memory_space<smem>>) -> (i32, i32, i32) {
    %c0_i32 = arith.constant 0 : i32
    %c0_i32_0 = arith.constant 0 : i32
    return %arg0, %arg1, %c0_i32 : i32, i32, i32
  }
}

</mosaic_0001>

<bundles_post_ra>
// kernel: tpu_custom_call.1
= control target key start
LH: loop header
LB: loop body
LE: loop exit
PB: predicated region body
PF: predicated region fallthrough
CT: control target
= control target key end

     0   :  { %s1562_s0 = inlined_call_operand.<no memory space> [shape: s32[1], index: 0, kind: input, shape index: {}]   ;;  %s1563_s1 = inlined_call_operand.<no memory space> [shape: s32[1], index: 1, kind: input, shape index: {}]   ;;  %s1564_s2 = inlined_call_operand.hbm [shape: f32[2,8,32], index: 2, kind: input, shape index: {}]   ;;  %s1565_s3 = inlined_call_operand.hbm [shape: f32[2,8,32], index: 3, kind: input, shape index: {}]   ;;  %s1566_s4 = inlined_call_operand.hbm [shape: f32[2,8,32], index: 4, kind: input, shape index: {}]   ;;  %s1567_s5 = inlined_call_operand.vmem [shape: f32[8,8], index: 5, kind: input, shape index: {}]   ;;  %s1568_s6 = inlined_call_operand.hbm [shape: f32[2,8,32], index: 6, kind: output, shape index: {}]  }
   0x1   :  { %1584 = sst [smem:[#allocation28_spill]] %s1565_s3 }
   0x2   :  { %1585 = sst [smem:[#allocation29_spill]] %s1568_s6 }
   0x3   :  { %11 = sst [smem:[#allocation7]] %s1562_s0 }
   0x4   :  { %12 = sst [smem:[#allocation8]] %s1563_s1 }
   0x5   :  { %13 = vsyncpa [#allocation10], 0 }
   0x6   :  { %15 = vsyncpa [#allocation10 + $0x1], 0 }
   0x7   :  { %16 = vsyncpa [#allocation13], 0 }
   0x8   :  { %18 = vsyncpa [#allocation13 + $0x1], 0 }
   0x9   :  { %19 = vsyncpa [#allocation11], 0 }
   0xa   :  { %21 = vsyncpa [#allocation11 + $0x1], 0  ;;  %s1205_s25 = smov 0   ;;  %s1207_s26 = smov 0  }
   0xb   :  { %s1209_s27 = smov 0   ;;  %s1211_s28 = smov 0  }
   0xc   :  { %s1213_s29 = smov 0   ;;  %s1215_s0 = smov 0  }
   0xd   :  { %s1217_s30 = smov 0   ;;  %s1219_s1 = smov 0  }
   0xe   :  { %s1221_s7 = smov 0   ;;  %s1223_s8 = smov 0  }
   0xf   :  { %s1225_s9 = smov 0   ;;  %s1227_s10 = smov 0  }
  0x10 LB: > { %1586 = sst [smem:[#allocation20_spill]] %s1128_s0  ;;  %s1264_s11 = sadd.s32 4294967295, %s1152_s10   ;;  %s1152_s10 = sphi %s1227_s10, %s27_s10   ;;  %s1148_s9 = sphi %s1225_s9, %s1639_s9   ;;  %s1144_s8 = sphi %s1223_s8, %s1630_s8   ;;  %s1140_s7 = sphi %s1221_s7, %s1629_s7   ;;  %s1136_s1 = sphi %s1219_s1, %s1638_s1   ;;  %s1132_s30 = sphi %s1217_s30, %s1637_s30   ;;  %s1128_s0 = sphi %s1215_s0, %s1627_s0   ;;  %s1124_s29 = sphi %s1213_s29, %s1636_s29   ;;  %s1120_s28 = sphi %s1211_s28, %s1635_s28   ;;  %s1116_s27 = sphi %s1209_s27, %s1634_s27   ;;  %s1112_s26 = sphi %s1207_s26, %s1633_s26   ;;  %s1108_s25 = sphi %s1205_s25, %s1632_s25  }
  0x11   : > { %1587 = sst [smem:[#allocation21_spill]] %s1140_s7  ;;  %s46_s12 = sadd.s32 1, %s1148_s9 }
  0x12   : > { %1588 = sst [smem:[#allocation22_spill]] %s1144_s8  ;;  %p48_p0 = scmp.ge.s32.totalorder %s46_s12, 2 }
  0x13   : > { %1589 = sst [smem:[#allocation23_spill]] %s1148_s9  ;;  %p1573_p1 = scmp.eq.s32.totalorder %s1152_s10, 0 }
  0x14   : > { %p1572_p2 = scmp.eq.s32.totalorder %s1264_s11, 0  ;;  %s79_s13 = sld [smem:[#allocation8]] }
  0x15   : > { %s1641_s12 = smov (%p48_p0, %s46_s12), 0  ;;  %s87_s14 = sadd.s32 1, %s1128_s0 }
  0x16   : > { %1590 = sst [smem:[#allocation24_spill]] %s1641_s12  ;;  %p94_p3 = scmp.ne.s32.totalorder %s1128_s0, %s1124_s29 }
  0x17   : > { %s50_s15 = ssub.s32 %s1148_s9, %s1641_s12  ;;  %p100_p4 = scmp.ne.s32.totalorder %s1124_s29, %s1120_s28 }
  0x18   : > { %p1279_p5 = por %p94_p3, %p1573_p1  ;;  %p1571_p8 = scmp.lt.s32.totalorder %s1152_s10, 2 }
  0x19   : > { %p1286_p7 = por %p100_p4, %p1572_p2  ;;  %s249_s18 = sand.u32 1, %s1152_s10  }
  0x1a   : > { %p1292_p9 = scmp.eq.s32.totalorder %s50_s15, 0  ;;  %s251_s20 = sand.u32 1, %s1128_s0  }
  0x1b   : > { %s1592_s17 = scalar_select %p1286_p7, 1, 0 }
  0x1c   : > { %s1593_s19 = scalar_select %p1292_p9, 1, 0 }
  0x1d   : > { %s765_s21 = sshll.u32 %s251_s20, 3  ;;  %s259_s22 = sadd.s32 %s1148_s9, %s79_s13 }
  0x1e   : > { %s1301_s23 = scalar_select %p1292_p9, %s1128_s0, %s87_s14  }
  0x1f   : > { %s1303_s24 = sshll.u32 %s259_s22, 7  ;;  %s1595_s3 = sld [smem:[#allocation28_spill]] }
  0x20   : > { %1594 = sst [smem:[#allocation25_spill]] %s1301_s23  ;;  %s253_s15 = scalar_lea.vmem [#allocation12], %s765_s21 }
  0x21   : > { %s263_s8 = sshll.u32 %s253_s15, 4  ;;  %p1317_p10 = pnand %p1571_p8, %p1279_p5  ;;  %s1311_s8 = int_to_ptr.vmem [resolvable:$true] %s263_s8 }
  0x22   : > { %s1323_s14 = scalar_lea.sflag [#allocation13], %s249_s18 }
  0x23   : > { %p934_p0 = pneg %p1317_p10 }
  0x25   : > { %s1309_s6 = scalar_lea.hbm %s1595_s3, %s1303_s24  ;;  %s937_s16 = scalar_lea.hbm %s1595_s3, 256 }
  0x26   : > { %s932_s12 = scalar_lea.hbm %s1309_s6, 128  ;;  %p938_p5 = scmp.lt.s32.totalorder %s1309_s6, %s1595_s3 }
  0x27   : > { %p933_p13 = scmp.ne.s32.totalorder %s1309_s6, %s932_s12  ;;  %p939_p6 = scmp.lt.s32.totalorder %s937_s16, %s932_s12 }
  0x29   : > { %p935_p3 = pnand %p934_p0, %p933_p13  ;;  %p940_p8 = por %p939_p6, %p938_p5 }
  0x2b   : > { %p936_p4 = pneg %p935_p3 }
  0x2d   : > { %p941_p2 = pnand %p940_p8, %p936_p4 }
  0x2f   : > { %944 = shalt.err (!%p941_p2)
}
  0x30   : > { %s945_s18 = scalar_lea.vmem %s1311_s8, 128  ;;  %s1154_s15 = smov [#allocation12]  }
  0x31   : > { %p946_p1 = scmp.ne.s32.totalorder %s1311_s8, %s945_s18  ;;  %s950_s23 = sshll.u32 %s1154_s15, 4  ;;  %s951_s23 = int_to_ptr.vmem [resolvable:$false] %s950_s23 }
  0x32   : > { %s952_s20 = scalar_lea.vmem %s951_s23, 256  ;;  %p953_p3 = scmp.lt.s32.totalorder %s1311_s8, %s951_s23 }
  0x33   : > { %p948_p11 = pnand %p946_p1, %p934_p0  ;;  %p954_p12 = scmp.lt.s32.totalorder %s952_s20, %s945_s18 }
  0x35   : > { %p949_p13 = pneg %p948_p11  ;;  %p955_p7 = por %p954_p12, %p953_p3 }
  0x37   : > { %p956_p9 = pnand %p955_p7, %p949_p13 }
  0x39   : > { %959 = shalt.err (!%p956_p9)
}
  0x3a   : > { %811 = dma.hbm_to_vmem [thread:$0]  (!%p1317_p10), %s1309_s6, 128, %s1311_s8, %s1323_s14  }
  0x3b   : > { %p1597_p1 = scmp.lt.s32.totalorder %s1152_s10, 3  ;;  %p1598_p2 = scmp.ge.s32.totalorder %s1152_s10, 1 }
  0x3c   : > { %s760_s13 = sadd.s32 4294967294, %s1152_s10   ;;  %s55_s12 = sadd.s32 1, %s1140_s7 }
  0x3d   : > { %p1348_p6 = pnand %p1598_p2, %p1597_p1  ;;  %p62_p7 = scmp.ne.s32.totalorder %s1140_s7, %s1136_s1 }
  0x3e   : > { %p1600_p8 = scmp.ne.s32.totalorder %s1593_s19, 0  ;;  %p1602_p9 = scmp.eq.s32.totalorder %s1152_s10, 0 }
  0x3f   : > { %s1599_s23 = scalar_select %p1348_p6, 1, 0 }
  0x40   : > { %s1359_s21 = scalar_select %p1600_p8, %s1140_s7, %s55_s12  }
  0x41   : > { %p1363_p11 = por %p1602_p9, %p62_p7  ;;  %p68_p10 = scmp.ne.s32.totalorder %s1136_s1, %s1132_s30 }
  0x42   : > { %1601 = sst [smem:[#allocation26_spill]] %s1359_s21  ;;  %p190_p12 = scmp.eq.s32.totalorder %s1264_s11, 1 }
  0x43   : > { %p196_p0 = scmp.eq.s32.totalorder %s760_s13, 1  ;;  %p1604_p4 = scmp.eq.s32.totalorder %s1264_s11, 0 }
  0x44   : > { %s230_s8 = sand.u32 1, %s1140_s7   ;;  %p1377_p13 = por %p190_p12, %p62_p7 }
  0x45   : > { %p1372_p5 = por %p1604_p4, %p68_p10  ;;  %p1381_p3 = por %p196_p0, %p68_p10 }
  0x46   : > { %s1606_s22 = scalar_select %p1377_p13, 1, 0 }
  0x47   : > { %s1605_s6 = scalar_select %p1372_p5, 1, 0 }
  0x48   : > { %s1607_s28 = scalar_select %p1381_p3, 1, 0 }
  0x49   : > { %s763_s18 = sshll.u32 %s230_s8, 3  ;;  %s764_s15 = sshll.u32 %s1148_s9, 7 }
  0x4a   : > { %1608 = sst [smem:[#allocation27_spill]] %s1607_s28  ;;  %s240_s13 = scalar_lea.hbm %s1564_s2, %s764_s15 }
  0x4b   : > { %s234_s3 = scalar_lea.vmem [#allocation9], %s763_s18  ;;  %p1609_p1 = scmp.lt.s32.totalorder %s1152_s10, 2 }
  0x4c   : > { %s242_s21 = sshll.u32 %s234_s3, 4  ;;  %s231_s0 = scalar_lea.sflag [#allocation10], %s230_s8  ;;  %s243_s21 = int_to_ptr.vmem [resolvable:$true] %s242_s21 }
  0x4d   : > { %p1393_p2 = pnand %p1609_p1, %p1363_p11  ;;  %s973_s28 = scalar_lea.vmem %s243_s21, 128 }
  0x4e   : > { %p974_p9 = scmp.ne.s32.totalorder %s243_s21, %s973_s28  ;;  %s1155_s9 = smov [#allocation9]  }
  0x4f   : > { %p962_p7 = pneg %p1393_p2  ;;  %s978_s20 = sshll.u32 %s1155_s9, 4  ;;  %s979_s20 = int_to_ptr.vmem [resolvable:$false] %s978_s20 }
  0x50   : > { %s980_s18 = scalar_lea.vmem %s979_s20, 256  ;;  %p981_p0 = scmp.lt.s32.totalorder %s243_s21, %s979_s20 }
  0x51   : > { %p976_p10 = pnand %p974_p9, %p962_p7  ;;  %p982_p4 = scmp.lt.s32.totalorder %s980_s18, %s973_s28 }
  0x53   : > { %p977_p12 = pneg %p976_p10  ;;  %p983_p3 = por %p982_p4, %p981_p0 }
  0x55   : > { %p984_p13 = pnand %p983_p3, %p977_p12 }
  0x57   : > { %987 = shalt.err (!%p984_p13)
}
  0x58   : > { %808 = dma.hbm_to_vmem [thread:$0]  (!%p1393_p2), %s240_s13, 128, %s243_s21, %s231_s0  }
  0x59   : > { %s119_s3 = sadd.s32 1, %s1116_s27  ;;  %p126_p11 = scmp.ne.s32.totalorder %s1116_s27, %s1112_s26 }
  0x5a   : > { %s1405_s9 = scalar_select %p1600_p8, %s1116_s27, %s119_s3  }
  0x5b   : > { %p132_p13 = scmp.ne.s32.totalorder %s1112_s26, %s1108_s25  ;;  %s272_s7 = sand.u32 1, %s1116_s27  }
  0x5c   : > { %p1611_p3 = scmp.eq.s32.totalorder %s1152_s10, 0  ;;  %p1612_p7 = scmp.eq.s32.totalorder %s1264_s11, 0 }
  0x5d   : > { %s767_s8 = sshll.u32 %s272_s7, 3  ;;  %s1424_s12 = scalar_lea.hbm %s1566_s4, %s1303_s24 }
  0x5e   : > { %p128_p1 = por %p126_p11, %p1611_p3  ;;  %p1416_p9 = por %p132_p13, %p1612_p7 }
  0x5f   : > { %p1614_p2 = scmp.lt.s32.totalorder %s1152_s10, 2  ;;  %s274_s0 = scalar_lea.vmem [#allocation14], %s767_s8 }
  0x60   : > { %s1613_s16 = scalar_select %p1416_p9, 1, 0 }
  0x61   : > { %p1428_p8 = pnand %p1614_p2, %p128_p1  ;;  %s284_s19 = sshll.u32 %s274_s0, 4  ;;  %s285_s19 = int_to_ptr.vmem [resolvable:$true] %s284_s19 }
  0x62   : > { %s988_s21 = scalar_lea.hbm %s1424_s12, 128  ;;  %s993_s20 = scalar_lea.hbm %s1566_s4, 256 }
  0x63   : > { %p989_p10 = scmp.ne.s32.totalorder %s1424_s12, %s988_s21  ;;  %p990_p12 = pneg %p1428_p8 }
  0x64   : > { %p994_p11 = scmp.lt.s32.totalorder %s1424_s12, %s1566_s4  ;;  %p995_p13 = scmp.lt.s32.totalorder %s993_s20, %s988_s21 }
  0x65   : > { %p991_p0 = pnand %p990_p12, %p989_p10 }
  0x66   : > { %p996_p3 = por %p995_p13, %p994_p11 }
  0x67   : > { %p992_p4 = pneg %p991_p0 }
  0x69   : > { %p997_p1 = pnand %p996_p3, %p992_p4 }
  0x6b   : > { %1000 = shalt.err (!%p997_p1)
}
  0x6c   : > { %s1001_s7 = scalar_lea.vmem %s285_s19, 128  ;;  %s1156_s8 = smov [#allocation14]  }
  0x6d   : > { %p1002_p7 = scmp.ne.s32.totalorder %s285_s19, %s1001_s7  ;;  %s1006_s28 = sshll.u32 %s1156_s8, 4  ;;  %s1007_s28 = int_to_ptr.vmem [resolvable:$false] %s1006_s28 }
  0x6e   : > { %s1008_s15 = scalar_lea.vmem %s1007_s28, 256  ;;  %p1009_p10 = scmp.lt.s32.totalorder %s285_s19, %s1007_s28 }
  0x6f   : > { %p1004_p2 = pnand %p1002_p7, %p990_p12  ;;  %p1010_p0 = scmp.lt.s32.totalorder %s1008_s15, %s1001_s7 }
  0x71   : > { %p1005_p9 = pneg %p1004_p2  ;;  %p1011_p5 = por %p1010_p0, %p1009_p10 }
  0x73   : > { %p1012_p6 = pnand %p1011_p5, %p1005_p9 }
  0x75   : > { %1015 = shalt.err (!%p1012_p6)
}
  0x76   : > { %814 = dma.hbm_to_vmem [thread:$0]  (!%p1428_p8), %s1424_s12, 128, %s285_s19, %s1323_s14  }
  0x77   : > { %p1616_p4 = scmp.ne.s32.totalorder %s1599_s23, 0 }
  0x78   : > { %s1450_s0 = sand.u32 (!%p1616_p4), 1, %s1136_s1   ;;  %p1617_p6 = scmp.ne.s32.totalorder (!%p1616_p4), %s1605_s6, 0 }
  0x79   : > { %293 = sbr.rel (%p1616_p4) target bundleno = 983 (0x3d7), region = 36  ;;  %s770_s21 = sshll.u32 (!%p1616_p4), %s1450_s0, 3 }
  0x7a   : > { %s296_s24 = scalar_lea.sflag (!%p1616_p4), [#allocation10], %s1450_s0  ;;  %s299_s13 = scalar_lea.vmem (!%p1616_p4), [#allocation9], %s770_s21 }
  0x7e   : > { %1091 = dma.done.wait (%p1617_p6), %s296_s24, 128  }
  0x7f   : > { %1093 = vsyncadd (%p1617_p6), %s296_s24, 4294967168  ;;  %s304_s14 = sand.u32 1, %s1264_s11   ;;  %s306_s23 = sand.u32 1, %s1124_s29  }
  0x80   : > { %s1462_s12 = sshll.u32 %s306_s23, 3  ;;  %s305_s25 = scalar_lea.sflag [#allocation13], %s304_s14 }
  0x81   : > { %s308_s19 = scalar_lea.vmem [#allocation12], %s1462_s12  ;;  %p1618_p5 = scmp.ne.s32.totalorder %s1592_s17, 0 }
  0x83   : > { %1095 = dma.done.wait (%p1618_p5), %s305_s25, 128  }
  0x84   : > { %1097 = vsyncadd (%p1618_p5), %s305_s25, 4294967168  ;;  %s315_s20 = sand.u32 1, %s1112_s26   ;;  %p1619_p9 = scmp.ne.s32.totalorder %s1613_s16, 0 }
  0x85   : > { %s1470_s6 = sshll.u32 %s315_s20, 3 }
  0x86   : > { %s317_s18 = scalar_lea.vmem [#allocation14], %s1470_s6 }
  0x87   : > { %1099 = dma.done.wait (%p1619_p9), %s305_s25, 128  }
  0x88   : > { %1101 = vsyncadd (%p1619_p9), %s305_s25, 4294967168  ;;  %vm382_vm0 = vcmask 261120   ;;  %vm384_vm1 = vcmask 7168   ;;  %s366_s11 = sld [smem:[#allocation8]]  ;;  %v1157_v0 = vmov -inf   ;;  %v1158_v1 = vmov 0.0  }
  0x89   : > { %385 = vst.msk [vmem:[#allocation3] sm:$0xff] %vm384_vm1, %v1157_v0  ;;  %386 = vst.msk [vmem:[#allocation4] sm:$0xff] %vm384_vm1, %v1158_v1  ;;  %s389_s17 = sld [smem:[#allocation7]]  ;;  %v380_v2 = vld [vmem:[%s299_s13] sm:$0xff]  ;;  %s1488_s28 = scalar_lea.vmem [#allocation15], %s770_s21 }
  0x8a   : > { %387 = vst.msk [vmem:[#allocation5] sm:$0xff] %vm382_vm0, %v1158_v1  ;;  %v381_v3 = vmul.f32 0.17677669, %v380_v2 }
  0x8c   : > { %383 = vst.msk [vmem:[#allocation2] sm:$0xff] %vm382_vm0, %v381_v3 }
  0x8e   : > { %p369_p8 = scmp.lt.s32.totalorder %s366_s11, 0 }
  0x8f   : > { %p775_p12 = scmp.eq.s32.totalorder %s389_s17, 0 }
  0x90   : > { %s1643_s11 = smov (!%p369_p8, %s366_s11), 0 }
  0x91   : > { %s774_s16 = sshll.u32 %s1643_s11, 3  ;;  %393 = sbr.rel (%p775_p12) target bundleno = 829 (0x33d), region = 56 }
  0x92   : > { %s1484_s8 = scalar_lea.vmem %s1567_s5, %s774_s16 }
  0x96   : > { %v395_v4 = vld [vmem:[%s308_s19] sm:$0xff]  ;;  %v1159_v5 = vmov 0.0   ;;  %vm1160_vm2 = vmmov 0   ;;  %v394_v6 = vld [vmem:[#allocation2] sm:$0xff]  ;;  %vm476_vm3 = vcmask 64512   ;;  %v1161_v10 = vmov 0  }
  0x97   : > { %787 = vmatprep.subr.mxu0 %v1159_v5  ;;  %789 = vmatprep.mubr.msk.f32.mxu0 %vm1160_vm2, %v1159_v5  ;;  %v475_v11 = vld [vmem:[#allocation3] sm:$0xff]  ;;  %v397_v19 = vld [vmem:[%s1484_s8] sm:$0xff]  ;;  %v493_v25 = vld [vmem:[#allocation4] sm:$0xff] }
  0x98   : > { %788 = vmatpush3.xpose.msk.msra.mxu0 %vm382_vm0, %v395_v4  ;;  %792 = vmatprep.subr.mxu1 %v1159_v5  ;;  %v396_v15 = vld [vmem:[%s317_s18] sm:$0xff]  ;;  %v501_v29 = vld [vmem:[#allocation5] sm:$0xff] }
  0x99   : > { %794 = vmatprep.mubr.msk.f32.mxu1 %vm1160_vm2, %v1159_v5  ;;  %923 = vset.pattern.permute.xlu0 %v1161_v10 }
  0x9a   : > { %924 = vset.pattern.permute.xlu1 %v1161_v10  ;;  %793 = vmatpush3.msra.mxu1 %v396_v15 }
  0x9b   : > { %790 = vmatmul.mubr.msk.f32.vlgmr.msra.gmra.mxu0 %vm382_vm0, %v394_v6 }
 0x15b   : > { %v471_v7 = vpop.f32.mrf.mxu0 }
 0x15c   : > { %v477_v8 = vsel %vm476_vm3, %v471_v7, -inf }
 0x15d   : > { %478 = vmax.xlane.f32.xlu0 %v477_v8  ;;  %v791_v9 = vpop.f32.mrf.mxu0 }
 0x1e6   : > { %v479_v12 = vpop.xlane.xlu0 %478 }
 0x1e7   : > { %v480_v13 = vmax.f32 %v475_v11, %v479_v12 }
 0x1e9   : > { %v481_v14 = vsub.f32 %v475_v11, %v480_v13  ;;  %583 = vst.msk [vmem:[#allocation3] sm:$0xff] %vm384_vm1, %v480_v13  ;;  %486 = vperm.xlu0 %923, %v480_v13  }
 0x1eb   : > { %v482_v22 = vmul.f32 1.442695, %v481_v14 }
 0x264   : > { %v487_v16 = vpop.permute.xlu0 %486 }
 0x265   : > { %v489_v17 = vsub.f32 %v471_v7, %v487_v16 }
 0x267   : > { %v490_v18 = vmul.f32 1.442695, %v489_v17 }
 0x269   : > { %925 = vpow2.f32 %v490_v18 }
 0x26a   : > { %927 = vpow2.f32 %v482_v22 }
 0x276   : > { %v926_v20 = vpop.eup %925 }
 0x277   : > { %v492_v21 = vmul.f32 %v926_v20, %v397_v19  ;;  %v928_v24 = vpop.eup %927 }
 0x278   : > { %v494_v26 = vmul.f32 %v928_v24, %v493_v25 }
 0x279   : > { %795 = vmatmul.mubr.msk.f32.vlgmr.msra.gmra.mxu1 %vm476_vm3, %v492_v21  ;;  %v495_v23 = vsel %vm476_vm3, %v492_v21, 0.0 }
 0x27a   : > { %496 = vadd.xlane.f32.xlu1 %v495_v23 }
 0x28b   : > { %504 = vperm.xlu1 %924, %v928_v24  }
 0x303   : > { %v497_v27 = vpop.xlane.xlu1 %496 }
 0x304   : > { %v498_v28 = vadd.f32 %v497_v27, %v494_v26 }
 0x306   : > { %500 = vst.msk [vmem:[#allocation4] sm:$0xff] %vm384_vm1, %v498_v28 }
 0x307   : > { %v505_v30 = vpop.permute.xlu1 %504 }
 0x308   : > { %v507_v31 = vmul.f32 %v505_v30, %v501_v29 }
 0x339   : > { %v577_v32 = vpop.f32.mrf.mxu1 }
 0x33a   : > { %v581_v33 = vadd.f32 %v577_v32, %v507_v31 }
 0x33b   : > { %v796_v34 = vpop.f32.mrf.mxu1 }
 0x33c   : > { %582 = vst.msk [vmem:[#allocation5] sm:$0xff] %vm382_vm0, %v581_v33 }
 0x33d PF: > { %v587_v35 = vld [vmem:[#allocation4] sm:$0xff]  ;;  %s1620_s15 = sld [smem:[#allocation22_spill]]  ;;  %v1162_v36 = vmov 0   ;;  %s613_s24 = sshll.u32 %s1488_s28, 4  ;;  %s614_s24 = int_to_ptr.vmem [resolvable:$true] %s613_s24 }
 0x33e   : > { %929 = vset.pattern.permute.xlu0 %v1162_v36  ;;  %930 = vrcp.f32 %v587_v35  ;;  %s1621_s23 = sld [smem:[#allocation29_spill]]  ;;  %s599_s25 = scalar_lea.sflag [#allocation11], %s1450_s0 }
 0x33f   : > { %s1016_s19 = scalar_lea.vmem %s614_s24, 128  ;;  %p1622_p13 = scmp.ne.s32.totalorder %s1606_s22, 0 }
 0x340   : > { %p1017_p11 = scmp.ne.s32.totalorder %s614_s24, %s1016_s19  ;;  %s1163_s20 = smov [#allocation15]  }
 0x341   : > { %s1020_s6 = sshll.u32 %s1163_s20, 4  ;;  %s1021_s6 = int_to_ptr.vmem [resolvable:$false] %s1020_s6 }
 0x342   : > { %p1018_p3 = pnand %p1017_p11, %p1622_p13  ;;  %s1022_s18 = scalar_lea.vmem %s1021_s6, 256 }
 0x343   : > { %v589_v38 = vld [vmem:[#allocation5] sm:$0xff]  ;;  %s780_s21 = sshll.u32 %s1620_s15, 7  ;;  %p1023_p7 = scmp.lt.s32.totalorder %s614_s24, %s1021_s6 }
 0x344   : > { %s611_s12 = scalar_lea.hbm %s1621_s23, %s780_s21  ;;  %p1019_p1 = pneg %p1018_p3 }
 0x345   : > { %p1024_p2 = scmp.lt.s32.totalorder %s1022_s18, %s1016_s19 }
 0x347   : > { %p1025_p10 = por %p1024_p2, %p1023_p7 }
 0x349   : > { %p1026_p0 = pnand %p1025_p10, %p1019_p1 }
 0x34b   : > { %v931_v37 = vpop.eup %930 }
 0x34c   : > { %592 = vperm.xlu0 %929, %v931_v37  }
 0x3c7   : > { %v593_v39 = vpop.permute.xlu0 %592 }
 0x3c8   : > { %v595_v40 = vmul.f32 %v593_v39, %v589_v38 }
 0x3ca   : > { %597 = vst.msk [vmem:[%s1488_s28] sm:$0xff] %vm382_vm0, %v595_v40 }
 0x3cb   : > { %1029 = shalt.err (!%p1026_p0)
}
 0x3cc   : > { %s1030_s11 = scalar_lea.hbm %s611_s12, 128  ;;  %s1034_s16 = scalar_lea.hbm %s1621_s23, 256 }
 0x3cd   : > { %p1031_p4 = scmp.ne.s32.totalorder %s611_s12, %s1030_s11  ;;  %p1035_p9 = scmp.lt.s32.totalorder %s611_s12, %s1621_s23 }
 0x3ce   : > { %p1036_p8 = scmp.lt.s32.totalorder %s1034_s16, %s1030_s11 }
 0x3cf   : > { %p1032_p6 = pnand %p1031_p4, %p1622_p13 }
 0x3d0   : > { %p1037_p12 = por %p1036_p8, %p1035_p9 }
 0x3d1   : > { %p1033_p5 = pneg %p1032_p6 }
 0x3d3   : > { %p1038_p11 = pnand %p1037_p12, %p1033_p5 }
 0x3d5   : > { %1041 = shalt.err (!%p1038_p11)
}
 0x3d6   : > { %803 = dma.vmem_to_hbm [thread:$0]  (%p1622_p13), %s614_s24, 128, %s611_s12, %s599_s25  }
 0x3d7 PF: > { %s1623_s8 = sld [smem:[#allocation27_spill]]  ;;  %s625_s28 = sand.u32 1, %s1132_s30  }
 0x3d8   : > { %p1625_p1 = scmp.ge.s32.totalorder %s1152_s10, 2  ;;  %s626_s15 = scalar_lea.sflag [#allocation11], %s625_s28 }
 0x3dd   : > { %p1624_p3 = scmp.ne.s32.totalorder %s1623_s8, 0 }
 0x3df   : > { %p816_p7 = pnand %p1625_p1, %p1624_p3 }
 0x3e1   : > { %p817_p2 = pneg %p816_p7 }
 0x3e3   : > { %1103 = dma.done.wait (%p817_p2), %s626_s15, 128  }
 0x3e4   : > { %1105 = vsyncadd (%p817_p2), %s626_s15, 4294967168  ;;  %s27_s10 = sadd.s32 1, %s1152_s10   ;;  %s1626_s22 = sld [smem:[#allocation20_spill]] }
 0x3e5   : > { %p24_p10 = scmp.ge.s32.totalorder %s27_s10, 4   ;;  %s1627_s0 = sld [smem:[#allocation25_spill]] }
 0x3e6   : > { %s1628_s21 = sld [smem:[#allocation21_spill]]  ;;  %s1632_s25 = smov %s1112_s26 }
 0x3e7   : > { %s1629_s7 = sld [smem:[#allocation26_spill]]  ;;  %s1633_s26 = smov %s1116_s27 }
 0x3e8   : > { %s1630_s8 = sld [smem:[#allocation23_spill]]  ;;  %s1634_s27 = smov %s1405_s9 }
 0x3e9   : > { %s1631_s24 = sld [smem:[#allocation24_spill]]  ;;  %s1635_s28 = smov %s1124_s29 }
 0x3ea   : > { %s1636_s29 = smov %s1626_s22  ;;  %s1637_s30 = smov %s1136_s1 }
 0x3eb   :  { %26 = sbr.rel (!%p24_p10) target bundleno = 16 (0x10), region = 120 }
 0x3ec   : > { %s1638_s1 = smov %s1628_s21 }
 0x3ef   : > { %s1639_s9 = smov %s1631_s24 }
 0x3f0   :  { %631 = vsyncpa [#allocation10], 1 }
 0x3f1   :  { %633 = vsyncpa [#allocation10 + $0x1], 1 }
 0x3f2   :  { %634 = vsyncpa [#allocation13], 1 }
 0x3f3   :  { %636 = vsyncpa [#allocation13 + $0x1], 1 }
 0x3f4   :  { %637 = vsyncpa [#allocation11], 1 }
 0x3f5   :  { %639 = vsyncpa [#allocation11 + $0x1], 1 }

</bundles_post_ra>
